<compile_context>
chip_gen: v5e
topology: v5e:2x2
jax: 0.10.0
libtpu: 0.0.40
codegen_flags: <defaults>
</compile_context>

<pallas_src>
import functools

import jax
import jax.numpy as jnp
import numpy as np
from jax import lax
from jax.experimental import pallas as pl
from jax.experimental.pallas import tpu as pltpu


def _simulator_kernel(orders_ref, emb_ref, ba_ref, predict_ref, mse_ref, *,
                      chunk, bs_actual, need_mask, use_stride0):
    pid = pl.program_id(0)
    fb, tile = orders_ref.shape
    V = emb_ref.shape[0]

    emb = emb_ref[...]                      # (V, 2) f32
    emb_a = emb[:, 0:1]                     # (V, 1)
    emb_b = emb[:, 1:2]                     # (V, 1)

    # Hoisted iotas (same shape for every lane chunk; chunk divides tile).
    vocab_iota = lax.broadcasted_iota(jnp.int32, (V, chunk), 0)
    if need_mask:
        lane_iota = lax.broadcasted_iota(jnp.int32, (1, chunk), 1)

    partial = jnp.zeros((1, 1), jnp.float32)

    # Static lane-chunk loop keeps the counts accumulator <= ~32 vregs.
    # TODO(synk): for V beyond a few hundred, switch this VPU compare-and-count
    #             scheme to a K-blocked one-hot bf16 MXU matmul or a DMA gather.
    for c0 in range(0, tile, chunk):
        # counts[v, b] = #{f : orders[f, b] == v}
        # sum_f emb[orders[f, b], c] == sum_v counts[v, b] * emb[v, c]
        counts = jnp.zeros((V, chunk), jnp.float32)
        for f in range(fb):                 # fb is small & static
            if use_stride0:
                # Stride-0 sublane-broadcast load: replication happens in the
                # vld slots instead of on the saturated VALU path.
                row = orders_ref[pl.ds(f, V, stride=0), pl.ds(c0, chunk)]
            else:
                row = orders_ref[pl.ds(f, 1), pl.ds(c0, chunk)]   # (1, chunk)
            counts = counts + (row == vocab_iota).astype(jnp.float32)

        sum_a = jnp.sum(counts * emb_a, axis=0, keepdims=True)   # (1, chunk)
        sum_b = jnp.sum(counts * emb_b, axis=0, keepdims=True)   # (1, chunk)

        before = ba_ref[pl.ds(0, 1), pl.ds(c0, chunk)]           # (1, chunk)
        after = ba_ref[pl.ds(1, 1), pl.ds(c0, chunk)]            # (1, chunk)

        # predict_loss = sum(a, dim=1) * before_loss + sum(b, dim=1)
        # TODO(synk): nn.Embedding raises on out-of-range indices; here they
        #             silently contribute 0.
        predict = sum_a * before + sum_b
        predict_ref[pl.ds(0, 1), pl.ds(c0, chunk)] = predict

        diff = after - predict
        if need_mask:
            col = pid * tile + c0 + lane_iota
            diff = jnp.where(col < bs_actual, diff, 0.0)
        partial = partial + jnp.sum(diff * diff, keepdims=True)

    # Per-block MSE partial, lane-dense (all 128 lanes carry the same value).
    mse_ref[...] = jnp.broadcast_to(partial, mse_ref.shape)


_STRIDE0_BROADCAST_OK = None  # cached capability probe for stride-0 slices


def simulator_forward(emb_weight, orders, before_loss, after_loss,
                      test_sample_ids, *, train_example_nums,
                      hyper_parameter, is_train=True, bs_tile=2048):
    """JAX wrapper reproducing Simulator.forward semantics."""
    global _STRIDE0_BROADCAST_OK

    bs, fb = orders.shape
    V, two = emb_weight.shape
    assert two == 2

    # _adjust_orders: pure index arithmetic -> plain JAX glue.
    new_orders = (train_example_nums * test_sample_ids[:, None]
                  + orders).astype(jnp.int32)

    # Lane-dense layout: batch on the last (lane) axis everywhere.
    if bs <= bs_tile:
        tile = bs                       # single block == full array (legal block)
        bs_pad = bs
    else:
        tile = bs_tile                  # multiple of 128 -> lane-aligned blocks
        bs_pad = pl.cdiv(bs, tile) * tile
    nblk = bs_pad // tile
    pad = bs_pad - bs

    # Lane chunk for the counts accumulator: keep V*chunk <= ~32K f32
    # (~32 vregs) so the hot VALU loop never spills; vreg file is identical on
    # v5e/v6e/v7x.
    if tile % 128 == 0:
        budget = max(128, ((32 * 1024) // max(V, 1)) // 128 * 128)
        chunk = 128
        for cand in range(256, tile + 1, 128):
            if tile % cand == 0 and cand <= budget:
                chunk = cand
    else:
        chunk = tile

    orders_t = jnp.transpose(new_orders)                             # (fb, bs)
    ba = jnp.stack([before_loss, after_loss]).astype(jnp.float32)    # (2, bs)
    if pad:
        orders_t = jnp.pad(orders_t, ((0, 0), (0, pad)))
        ba = jnp.pad(ba, ((0, 0), (0, pad)))
    emb_f32 = emb_weight.astype(jnp.float32)

    def call(use_stride0):
        kernel = functools.partial(
            _simulator_kernel, chunk=chunk, bs_actual=bs,
            need_mask=(pad != 0), use_stride0=use_stride0)
        grid_spec = pltpu.PrefetchScalarGridSpec(
            num_scalar_prefetch=0,
            grid=(nblk,),
            in_specs=[
                pl.BlockSpec((fb, tile), lambda i: (0, i)),   # orders^T
                pl.BlockSpec((V, 2), lambda i: (0, 0)),       # embedding table
                pl.BlockSpec((2, tile), lambda i: (0, i)),    # [before; after]
            ],
            out_specs=(
                pl.BlockSpec((1, tile), lambda i: (0, i)),    # predict_loss
                pl.BlockSpec((1, 128), lambda i: (0, i)),     # per-block MSE
            ),
        )
        return pl.pallas_call(
            kernel,
            grid_spec=grid_spec,
            out_shape=(jax.ShapeDtypeStruct((1, bs_pad), jnp.float32),
                       jax.ShapeDtypeStruct((1, nblk * 128), jnp.float32)),
            compiler_params=pltpu.CompilerParams(
                # No cross-block state -> fully parallel (2x on v7x megacore).
                dimension_semantics=("parallel",),
                # Tiny per-step buffers; keep within v7x's 64 MiB physical VMEM.
                vmem_limit_bytes=32 * 1024 * 1024),
        )(orders_t, emb_f32, ba)

    if _STRIDE0_BROADCAST_OK is None:
        try:
            predict_pad, mse_partials = call(use_stride0=True)
            _STRIDE0_BROADCAST_OK = True
        except Exception:
            _STRIDE0_BROADCAST_OK = False
            predict_pad, mse_partials = call(use_stride0=False)
    else:
        predict_pad, mse_partials = call(use_stride0=_STRIDE0_BROADCAST_OK)

    predict_loss = predict_pad[0, :bs]
    mse_loss = jnp.sum(mse_partials.reshape(nblk, 128)[:, 0]) / bs

    # L2 is an O(V*2) op on the parameters -> cheap XLA-side reduction (perf
    # review: keep it out of the kernel).
    if is_train:
        l2_loss = jnp.float32(hyper_parameter) * (
            jnp.sqrt(jnp.sum(emb_f32[:, 0] ** 2))
            + jnp.sqrt(jnp.sum(emb_f32[:, 1] ** 2)))
    else:
        l2_loss = jnp.float32(0.0)

    return {"mse_loss": mse_loss,
            "L2_loss": l2_loss,
            "predict_loss": predict_loss,
            "tot_loss": mse_loss + l2_loss}


def _reference(emb_weight, orders, before_loss, after_loss, test_sample_ids,
               *, train_example_nums, hyper_parameter, is_train=True):
    """Pure-JAX reference mirroring the PyTorch module."""
    new_orders = train_example_nums * test_sample_ids[:, None] + orders
    hidden = emb_weight[new_orders]                     # (bs, fb, 2)
    a = hidden[:, :, 0]
    b = hidden[:, :, 1]
    predict = jnp.sum(a, axis=1) * before_loss + jnp.sum(b, axis=1)
    mse = jnp.mean((after_loss - predict) ** 2)
    l2 = 0.0
    if is_train:
        l2 = hyper_parameter * (jnp.linalg.norm(emb_weight[:, 0])
                                + jnp.linalg.norm(emb_weight[:, 1]))
    return {"mse_loss": mse, "L2_loss": l2,
            "predict_loss": predict, "tot_loss": mse + l2}


if __name__ == "__main__":
    def run_case(*, bs, fb, train_example_nums, test_example_nums,
                 hyper_parameter, is_train, bs_tile, seed, rtol, atol):
        V = train_example_nums * test_example_nums
        key = jax.random.PRNGKey(seed)
        k1, k2, k3, k4, k5 = jax.random.split(key, 5)

        emb_weight = jax.random.normal(k1, (V, 2), dtype=jnp.float32)
        orders = jax.random.randint(k2, (bs, fb), 0, train_example_nums,
                                    dtype=jnp.int32)
        test_sample_ids = jax.random.randint(k3, (bs,), 0, test_example_nums,
                                             dtype=jnp.int32)
        before_loss = jax.random.uniform(k4, (bs,), dtype=jnp.float32)
        after_loss = jax.random.uniform(k5, (bs,), dtype=jnp.float32)

        out = simulator_forward(emb_weight, orders, before_loss, after_loss,
                                test_sample_ids,
                                train_example_nums=train_example_nums,
                                hyper_parameter=hyper_parameter,
                                is_train=is_train, bs_tile=bs_tile)
        jax.block_until_ready(out["tot_loss"])

        ref = _reference(emb_weight, orders, before_loss, after_loss,
                         test_sample_ids,
                         train_example_nums=train_example_nums,
                         hyper_parameter=hyper_parameter, is_train=is_train)

        np.testing.assert_allclose(np.asarray(out["predict_loss"]),
                                   np.asarray(ref["predict_loss"]),
                                   rtol=rtol, atol=atol)
        np.testing.assert_allclose(float(out["mse_loss"]),
                                   float(ref["mse_loss"]), rtol=rtol, atol=atol)
        np.testing.assert_allclose(float(out["L2_loss"]),
                                   float(ref["L2_loss"]), rtol=rtol, atol=atol)
        np.testing.assert_allclose(float(out["tot_loss"]),
                                   float(ref["tot_loss"]), rtol=rtol, atol=atol)

    # Small case matching the original module defaults (bs=2, fb=8, V=32).
    run_case(bs=2, fb=8, train_example_nums=8, test_example_nums=4,
             hyper_parameter=0.01, is_train=True, bs_tile=2048, seed=0,
             rtol=1e-5, atol=1e-6)
    # Multi-block grid + padded-tail masking path.
    run_case(bs=300, fb=8, train_example_nums=8, test_example_nums=4,
             hyper_parameter=0.05, is_train=True, bs_tile=128, seed=1,
             rtol=1e-5, atol=1e-5)
    # Multi-chunk-per-block path (counts chunking) and the is_train=False branch.
    run_case(bs=4096, fb=8, train_example_nums=8, test_example_nums=4,
             hyper_parameter=0.0, is_train=False, bs_tile=2048, seed=2,
             rtol=1e-4, atol=1e-4)

    print("KERNEL_OK")
</pallas_src>

<mosaic_0001>
module attributes {stable_mosaic.version = 11 : i64} {
  func.func @_simulator_kernel(%arg0: i32, %arg1: memref<8x2xi32, #tpu.memory_space<vmem>>, %arg2: memref<32x2xf32, #tpu.memory_space<vmem>>, %arg3: memref<2x2xf32, #tpu.memory_space<vmem>>, %arg4: memref<1x2xf32, #tpu.memory_space<vmem>>, %arg5: memref<1x128xf32, #tpu.memory_space<vmem>>) attributes {dimension_semantics = [#tpu.dimension_semantics<parallel>], iteration_bounds = array<i64: 1>, scalar_prefetch = 0 : i64, scratch_operands = 0 : i64, tpu.core_type = #tpu.core_type<tc>, window_params = [{transform_indices = @transform_0, window_bounds = array<i64: 8, 2>}, {pipeline_mode = #tpu.pipeline_mode<synchronous>, transform_indices = @transform_1, window_bounds = array<i64: 32, 2>}, {transform_indices = @transform_2, window_bounds = array<i64: 2, 2>}, {transform_indices = @transform_3, window_bounds = array<i64: 1, 2>}, {transform_indices = @transform_4, window_bounds = array<i64: 1, 128>}]} {
    %c0 = arith.constant 0 : index
    %c0_0 = arith.constant 0 : index
    %0 = vector.load %arg2[%c0, %c0_0] : memref<32x2xf32, #tpu.memory_space<vmem>>, vector<32x2xf32>
    %1 = vector.extract_strided_slice %0 {offsets = [0, 0], sizes = [32, 1], strides = [1, 1]} : vector<32x2xf32> to vector<32x1xf32>
    %2 = vector.extract_strided_slice %0 {offsets = [0, 1], sizes = [32, 1], strides = [1, 1]} : vector<32x2xf32> to vector<32x1xf32>
    %3 = tpu.iota {dimensions = array<i32: 0>} : vector<32x2xi32>
    %cst = arith.constant 0.000000e+00 : f32
    %4 = vector.broadcast %cst : f32 to vector<1x1xf32>
    %cst_1 = arith.constant 0.000000e+00 : f32
    %5 = vector.broadcast %cst_1 : f32 to vector<32x2xf32>
    %c0_2 = arith.constant 0 : index
    %c0_3 = arith.constant 0 : index
    %6 = tpu.strided_load %arg1[%c0_2, %c0_3] {strides = array<i32: 0, 1>} : memref<8x2xi32, #tpu.memory_space<vmem>>, vector<32x2xi32>
    %7 = arith.cmpi eq, %6, %3 : vector<32x2xi32>
    %8 = arith.extui %7 : vector<32x2xi1> to vector<32x2xi32>
    %9 = arith.sitofp %8 : vector<32x2xi32> to vector<32x2xf32>
    %10 = arith.addf %5, %9 : vector<32x2xf32>
    %c1 = arith.constant 1 : index
    %c0_4 = arith.constant 0 : index
    %11 = tpu.strided_load %arg1[%c1, %c0_4] {strides = array<i32: 0, 1>} : memref<8x2xi32, #tpu.memory_space<vmem>>, vector<32x2xi32>
    %12 = arith.cmpi eq, %11, %3 : vector<32x2xi32>
    %13 = arith.extui %12 : vector<32x2xi1> to vector<32x2xi32>
    %14 = arith.sitofp %13 : vector<32x2xi32> to vector<32x2xf32>
    %15 = arith.addf %10, %14 : vector<32x2xf32>
    %c2 = arith.constant 2 : index
    %c0_5 = arith.constant 0 : index
    %16 = tpu.strided_load %arg1[%c2, %c0_5] {strides = array<i32: 0, 1>} : memref<8x2xi32, #tpu.memory_space<vmem>>, vector<32x2xi32>
    %17 = arith.cmpi eq, %16, %3 : vector<32x2xi32>
    %18 = arith.extui %17 : vector<32x2xi1> to vector<32x2xi32>
    %19 = arith.sitofp %18 : vector<32x2xi32> to vector<32x2xf32>
    %20 = arith.addf %15, %19 : vector<32x2xf32>
    %c3 = arith.constant 3 : index
    %c0_6 = arith.constant 0 : index
    %21 = tpu.strided_load %arg1[%c3, %c0_6] {strides = array<i32: 0, 1>} : memref<8x2xi32, #tpu.memory_space<vmem>>, vector<32x2xi32>
    %22 = arith.cmpi eq, %21, %3 : vector<32x2xi32>
    %23 = arith.extui %22 : vector<32x2xi1> to vector<32x2xi32>
    %24 = arith.sitofp %23 : vector<32x2xi32> to vector<32x2xf32>
    %25 = arith.addf %20, %24 : vector<32x2xf32>
    %c4 = arith.constant 4 : index
    %c0_7 = arith.constant 0 : index
    %26 = tpu.strided_load %arg1[%c4, %c0_7] {strides = array<i32: 0, 1>} : memref<8x2xi32, #tpu.memory_space<vmem>>, vector<32x2xi32>
    %27 = arith.cmpi eq, %26, %3 : vector<32x2xi32>
    %28 = arith.extui %27 : vector<32x2xi1> to vector<32x2xi32>
    %29 = arith.sitofp %28 : vector<32x2xi32> to vector<32x2xf32>
    %30 = arith.addf %25, %29 : vector<32x2xf32>
    %c5 = arith.constant 5 : index
    %c0_8 = arith.constant 0 : index
    %31 = tpu.strided_load %arg1[%c5, %c0_8] {strides = array<i32: 0, 1>} : memref<8x2xi32, #tpu.memory_space<vmem>>, vector<32x2xi32>
    %32 = arith.cmpi eq, %31, %3 : vector<32x2xi32>
    %33 = arith.extui %32 : vector<32x2xi1> to vector<32x2xi32>
    %34 = arith.sitofp %33 : vector<32x2xi32> to vector<32x2xf32>
    %35 = arith.addf %30, %34 : vector<32x2xf32>
    %c6 = arith.constant 6 : index
    %c0_9 = arith.constant 0 : index
    %36 = tpu.strided_load %arg1[%c6, %c0_9] {strides = array<i32: 0, 1>} : memref<8x2xi32, #tpu.memory_space<vmem>>, vector<32x2xi32>
    %37 = arith.cmpi eq, %36, %3 : vector<32x2xi32>
    %38 = arith.extui %37 : vector<32x2xi1> to vector<32x2xi32>
    %39 = arith.sitofp %38 : vector<32x2xi32> to vector<32x2xf32>
    %40 = arith.addf %35, %39 : vector<32x2xf32>
    %c7 = arith.constant 7 : index
    %c0_10 = arith.constant 0 : index
    %41 = tpu.strided_load %arg1[%c7, %c0_10] {strides = array<i32: 0, 1>} : memref<8x2xi32, #tpu.memory_space<vmem>>, vector<32x2xi32>
    %42 = arith.cmpi eq, %41, %3 : vector<32x2xi32>
    %43 = arith.extui %42 : vector<32x2xi1> to vector<32x2xi32>
    %44 = arith.sitofp %43 : vector<32x2xi32> to vector<32x2xf32>
    %45 = arith.addf %40, %44 : vector<32x2xf32>
    %46 = vector.broadcast %1 : vector<32x1xf32> to vector<32x2xf32>
    %47 = arith.mulf %45, %46 : vector<32x2xf32>
    %cst_11 = arith.constant dense<0.000000e+00> : vector<2xf32>
    %48 = vector.multi_reduction <add>, %47, %cst_11 [0] : vector<32x2xf32> to vector<2xf32>
    %49 = vector.shape_cast %48 : vector<2xf32> to vector<1x2xf32>
    %50 = vector.broadcast %2 : vector<32x1xf32> to vector<32x2xf32>
    %51 = arith.mulf %45, %50 : vector<32x2xf32>
    %cst_12 = arith.constant dense<0.000000e+00> : vector<2xf32>
    %52 = vector.multi_reduction <add>, %51, %cst_12 [0] : vector<32x2xf32> to vector<2xf32>
    %53 = vector.shape_cast %52 : vector<2xf32> to vector<1x2xf32>
    %c0_13 = arith.constant 0 : index
    %c0_14 = arith.constant 0 : index
    %54 = vector.load %arg3[%c0_13, %c0_14] : memref<2x2xf32, #tpu.memory_space<vmem>>, vector<1x2xf32>
    %c1_15 = arith.constant 1 : index
    %c0_16 = arith.constant 0 : index
    %55 = vector.load %arg3[%c1_15, %c0_16] : memref<2x2xf32, #tpu.memory_space<vmem>>, vector<1x2xf32>
    %56 = arith.mulf %49, %54 : vector<1x2xf32>
    %57 = arith.addf %56, %53 : vector<1x2xf32>
    %c0_17 = arith.constant 0 : index
    %c0_18 = arith.constant 0 : index
    %58 = vector.load %arg4[%c0_17, %c0_18] : memref<1x2xf32, #tpu.memory_space<vmem>>, vector<1x2xf32>
    tpu.vector_store %arg4[%c0_17, %c0_18], %57 {strides = array<i32>} : memref<1x2xf32, #tpu.memory_space<vmem>>, vector<1x2xf32>,
    %59 = arith.subf %55, %57 : vector<1x2xf32>
    %60 = arith.mulf %59, %59 : vector<1x2xf32>
    %61 = vector.shape_cast %60 : vector<1x2xf32> to vector<1x1x2xf32>
    %cst_19 = arith.constant dense<0.000000e+00> : vector<1xf32>
    %62 = vector.multi_reduction <add>, %61, %cst_19 [1, 2] : vector<1x1x2xf32> to vector<1xf32>
    %63 = vector.shape_cast %62 : vector<1xf32> to vector<1x1x1xf32>
    %64 = vector.extract %63[0, 0, 0] : f32 from vector<1x1x1xf32>
    %65 = vector.broadcast %64 : f32 to vector<1x1xf32>
    %66 = arith.addf %4, %65 : vector<1x1xf32>
    %67 = vector.shape_cast %66 : vector<1x1xf32> to vector<1x1xf32>
    %68 = vector.broadcast %67 : vector<1x1xf32> to vector<1x128xf32>
    %c0_20 = arith.constant 0 : index
    %c0_21 = arith.constant 0 : index
    %69 = vector.load %arg5[%c0_20, %c0_21] : memref<1x128xf32, #tpu.memory_space<vmem>>, vector<1x128xf32>
    tpu.vector_store %arg5[%c0_20, %c0_21], %68 {strides = array<i32>} : memref<1x128xf32, #tpu.memory_space<vmem>>, vector<1x128xf32>,
    return
  }
  func.func @transform_0(%arg0: i32) -> (i32, i32) {
    %c0_i32 = arith.constant 0 : i32
    %c0_i32_0 = arith.constant 0 : i32
    return %c0_i32, %arg0 : i32, i32
  }
  func.func @transform_1(%arg0: i32) -> (i32, i32) {
    %c0_i32 = arith.constant 0 : i32
    %c0_i32_0 = arith.constant 0 : i32
    %c0_i32_1 = arith.constant 0 : i32
    return %c0_i32, %c0_i32_0 : i32, i32
  }
  func.func @transform_2(%arg0: i32) -> (i32, i32) {
    %c0_i32 = arith.constant 0 : i32
    %c0_i32_0 = arith.constant 0 : i32
    return %c0_i32, %arg0 : i32, i32
  }
  func.func @transform_3(%arg0: i32) -> (i32, i32) {
    %c0_i32 = arith.constant 0 : i32
    %c0_i32_0 = arith.constant 0 : i32
    return %c0_i32, %arg0 : i32, i32
  }
  func.func @transform_4(%arg0: i32) -> (i32, i32) {
    %c0_i32 = arith.constant 0 : i32
    %c0_i32_0 = arith.constant 0 : i32
    return %c0_i32, %arg0 : i32, i32
  }
}

module attributes {stable_mosaic.version = 11 : i64} {
  func.func @_simulator_kernel(%arg0: i32, %arg1: memref<8x2xi32, #tpu.memory_space<vmem>>, %arg2: memref<32x2xf32, #tpu.memory_space<vmem>>, %arg3: memref<2x2xf32, #tpu.memory_space<vmem>>, %arg4: memref<1x2xf32, #tpu.memory_space<vmem>>, %arg5: memref<1x128xf32, #tpu.memory_space<vmem>>) attributes {dimension_semantics = [#tpu.dimension_semantics<parallel>], iteration_bounds = array<i64: 1>, scalar_prefetch = 0 : i64, scratch_operands = 0 : i64, tpu.core_type = #tpu.core_type<tc>, window_params = [{transform_indices = @transform_0, window_bounds = array<i64: 8, 2>}, {pipeline_mode = #tpu.pipeline_mode<synchronous>, transform_indices = @transform_1, window_bounds = array<i64: 32, 2>}, {transform_indices = @transform_2, window_bounds = array<i64: 2, 2>}, {transform_indices = @transform_3, window_bounds = array<i64: 1, 2>}, {transform_indices = @transform_4, window_bounds = array<i64: 1, 128>}]} {
    %c0 = arith.constant 0 : index
    %c0_0 = arith.constant 0 : index
    %0 = vector.load %arg2[%c0, %c0_0] : memref<32x2xf32, #tpu.memory_space<vmem>>, vector<32x2xf32>
    %1 = vector.extract_strided_slice %0 {offsets = [0, 0], sizes = [32, 1], strides = [1, 1]} : vector<32x2xf32> to vector<32x1xf32>
    %2 = vector.extract_strided_slice %0 {offsets = [0, 1], sizes = [32, 1], strides = [1, 1]} : vector<32x2xf32> to vector<32x1xf32>
    %3 = tpu.iota {dimensions = array<i32: 0>} : vector<32x2xi32>
    %cst = arith.constant 0.000000e+00 : f32
    %4 = vector.broadcast %cst : f32 to vector<1x1xf32>
    %cst_1 = arith.constant 0.000000e+00 : f32
    %5 = vector.broadcast %cst_1 : f32 to vector<32x2xf32>
    %c0_2 = arith.constant 0 : index
    %c0_3 = arith.constant 0 : index
    %6 = vector.load %arg1[%c0_2, %c0_3] : memref<8x2xi32, #tpu.memory_space<vmem>>, vector<1x2xi32>
    %7 = vector.broadcast %6 : vector<1x2xi32> to vector<32x2xi32>
    %8 = arith.cmpi eq, %7, %3 : vector<32x2xi32>
    %9 = arith.extui %8 : vector<32x2xi1> to vector<32x2xi32>
    %10 = arith.sitofp %9 : vector<32x2xi32> to vector<32x2xf32>
    %11 = arith.addf %5, %10 : vector<32x2xf32>
    %c1 = arith.constant 1 : index
    %c0_4 = arith.constant 0 : index
    %12 = vector.load %arg1[%c1, %c0_4] : memref<8x2xi32, #tpu.memory_space<vmem>>, vector<1x2xi32>
    %13 = vector.broadcast %12 : vector<1x2xi32> to vector<32x2xi32>
    %14 = arith.cmpi eq, %13, %3 : vector<32x2xi32>
    %15 = arith.extui %14 : vector<32x2xi1> to vector<32x2xi32>
    %16 = arith.sitofp %15 : vector<32x2xi32> to vector<32x2xf32>
    %17 = arith.addf %11, %16 : vector<32x2xf32>
    %c2 = arith.constant 2 : index
    %c0_5 = arith.constant 0 : index
    %18 = vector.load %arg1[%c2, %c0_5] : memref<8x2xi32, #tpu.memory_space<vmem>>, vector<1x2xi32>
    %19 = vector.broadcast %18 : vector<1x2xi32> to vector<32x2xi32>
    %20 = arith.cmpi eq, %19, %3 : vector<32x2xi32>
    %21 = arith.extui %20 : vector<32x2xi1> to vector<32x2xi32>
    %22 = arith.sitofp %21 : vector<32x2xi32> to vector<32x2xf32>
    %23 = arith.addf %17, %22 : vector<32x2xf32>
    %c3 = arith.constant 3 : index
    %c0_6 = arith.constant 0 : index
    %24 = vector.load %arg1[%c3, %c0_6] : memref<8x2xi32, #tpu.memory_space<vmem>>, vector<1x2xi32>
    %25 = vector.broadcast %24 : vector<1x2xi32> to vector<32x2xi32>
    %26 = arith.cmpi eq, %25, %3 : vector<32x2xi32>
    %27 = arith.extui %26 : vector<32x2xi1> to vector<32x2xi32>
    %28 = arith.sitofp %27 : vector<32x2xi32> to vector<32x2xf32>
    %29 = arith.addf %23, %28 : vector<32x2xf32>
    %c4 = arith.constant 4 : index
    %c0_7 = arith.constant 0 : index
    %30 = vector.load %arg1[%c4, %c0_7] : memref<8x2xi32, #tpu.memory_space<vmem>>, vector<1x2xi32>
    %31 = vector.broadcast %30 : vector<1x2xi32> to vector<32x2xi32>
    %32 = arith.cmpi eq, %31, %3 : vector<32x2xi32>
    %33 = arith.extui %32 : vector<32x2xi1> to vector<32x2xi32>
    %34 = arith.sitofp %33 : vector<32x2xi32> to vector<32x2xf32>
    %35 = arith.addf %29, %34 : vector<32x2xf32>
    %c5 = arith.constant 5 : index
    %c0_8 = arith.constant 0 : index
    %36 = vector.load %arg1[%c5, %c0_8] : memref<8x2xi32, #tpu.memory_space<vmem>>, vector<1x2xi32>
    %37 = vector.broadcast %36 : vector<1x2xi32> to vector<32x2xi32>
    %38 = arith.cmpi eq, %37, %3 : vector<32x2xi32>
    %39 = arith.extui %38 : vector<32x2xi1> to vector<32x2xi32>
    %40 = arith.sitofp %39 : vector<32x2xi32> to vector<32x2xf32>
    %41 = arith.addf %35, %40 : vector<32x2xf32>
    %c6 = arith.constant 6 : index
    %c0_9 = arith.constant 0 : index
    %42 = vector.load %arg1[%c6, %c0_9] : memref<8x2xi32, #tpu.memory_space<vmem>>, vector<1x2xi32>
    %43 = vector.broadcast %42 : vector<1x2xi32> to vector<32x2xi32>
    %44 = arith.cmpi eq, %43, %3 : vector<32x2xi32>
    %45 = arith.extui %44 : vector<32x2xi1> to vector<32x2xi32>
    %46 = arith.sitofp %45 : vector<32x2xi32> to vector<32x2xf32>
    %47 = arith.addf %41, %46 : vector<32x2xf32>
    %c7 = arith.constant 7 : index
    %c0_10 = arith.constant 0 : index
    %48 = vector.load %arg1[%c7, %c0_10] : memref<8x2xi32, #tpu.memory_space<vmem>>, vector<1x2xi32>
    %49 = vector.broadcast %48 : vector<1x2xi32> to vector<32x2xi32>
    %50 = arith.cmpi eq, %49, %3 : vector<32x2xi32>
    %51 = arith.extui %50 : vector<32x2xi1> to vector<32x2xi32>
    %52 = arith.sitofp %51 : vector<32x2xi32> to vector<32x2xf32>
    %53 = arith.addf %47, %52 : vector<32x2xf32>
    %54 = vector.broadcast %1 : vector<32x1xf32> to vector<32x2xf32>
    %55 = arith.mulf %53, %54 : vector<32x2xf32>
    %cst_11 = arith.constant dense<0.000000e+00> : vector<2xf32>
    %56 = vector.multi_reduction <add>, %55, %cst_11 [0] : vector<32x2xf32> to vector<2xf32>
    %57 = vector.shape_cast %56 : vector<2xf32> to vector<1x2xf32>
    %58 = vector.broadcast %2 : vector<32x1xf32> to vector<32x2xf32>
    %59 = arith.mulf %53, %58 : vector<32x2xf32>
    %cst_12 = arith.constant dense<0.000000e+00> : vector<2xf32>
    %60 = vector.multi_reduction <add>, %59, %cst_12 [0] : vector<32x2xf32> to vector<2xf32>
    %61 = vector.shape_cast %60 : vector<2xf32> to vector<1x2xf32>
    %c0_13 = arith.constant 0 : index
    %c0_14 = arith.constant 0 : index
    %62 = vector.load %arg3[%c0_13, %c0_14] : memref<2x2xf32, #tpu.memory_space<vmem>>, vector<1x2xf32>
    %c1_15 = arith.constant 1 : index
    %c0_16 = arith.constant 0 : index
    %63 = vector.load %arg3[%c1_15, %c0_16] : memref<2x2xf32, #tpu.memory_space<vmem>>, vector<1x2xf32>
    %64 = arith.mulf %57, %62 : vector<1x2xf32>
    %65 = arith.addf %64, %61 : vector<1x2xf32>
    %c0_17 = arith.constant 0 : index
    %c0_18 = arith.constant 0 : index
    %66 = vector.load %arg4[%c0_17, %c0_18] : memref<1x2xf32, #tpu.memory_space<vmem>>, vector<1x2xf32>
    tpu.vector_store %arg4[%c0_17, %c0_18], %65 {strides = array<i32>} : memref<1x2xf32, #tpu.memory_space<vmem>>, vector<1x2xf32>,
    %67 = arith.subf %63, %65 : vector<1x2xf32>
    %68 = arith.mulf %67, %67 : vector<1x2xf32>
    %69 = vector.shape_cast %68 : vector<1x2xf32> to vector<1x1x2xf32>
    %cst_19 = arith.constant dense<0.000000e+00> : vector<1xf32>
    %70 = vector.multi_reduction <add>, %69, %cst_19 [1, 2] : vector<1x1x2xf32> to vector<1xf32>
    %71 = vector.shape_cast %70 : vector<1xf32> to vector<1x1x1xf32>
    %72 = vector.extract %71[0, 0, 0] : f32 from vector<1x1x1xf32>
    %73 = vector.broadcast %72 : f32 to vector<1x1xf32>
    %74 = arith.addf %4, %73 : vector<1x1xf32>
    %75 = vector.shape_cast %74 : vector<1x1xf32> to vector<1x1xf32>
    %76 = vector.broadcast %75 : vector<1x1xf32> to vector<1x128xf32>
    %c0_20 = arith.constant 0 : index
    %c0_21 = arith.constant 0 : index
    %77 = vector.load %arg5[%c0_20, %c0_21] : memref<1x128xf32, #tpu.memory_space<vmem>>, vector<1x128xf32>
    tpu.vector_store %arg5[%c0_20, %c0_21], %76 {strides = array<i32>} : memref<1x128xf32, #tpu.memory_space<vmem>>, vector<1x128xf32>,
    return
  }
  func.func @transform_0(%arg0: i32) -> (i32, i32) {
    %c0_i32 = arith.constant 0 : i32
    %c0_i32_0 = arith.constant 0 : i32
    return %c0_i32, %arg0 : i32, i32
  }
  func.func @transform_1(%arg0: i32) -> (i32, i32) {
    %c0_i32 = arith.constant 0 : i32
    %c0_i32_0 = arith.constant 0 : i32
    %c0_i32_1 = arith.constant 0 : i32
    return %c0_i32, %c0_i32_0 : i32, i32
  }
  func.func @transform_2(%arg0: i32) -> (i32, i32) {
    %c0_i32 = arith.constant 0 : i32
    %c0_i32_0 = arith.constant 0 : i32
    return %c0_i32, %arg0 : i32, i32
  }
  func.func @transform_3(%arg0: i32) -> (i32, i32) {
    %c0_i32 = arith.constant 0 : i32
    %c0_i32_0 = arith.constant 0 : i32
    return %c0_i32, %arg0 : i32, i32
  }
  func.func @transform_4(%arg0: i32) -> (i32, i32) {
    %c0_i32 = arith.constant 0 : i32
    %c0_i32_0 = arith.constant 0 : i32
    return %c0_i32, %arg0 : i32, i32
  }
}

</mosaic_0001>

<bundles_post_ra>
// kernel: tpu_custom_call.1
= control target key start
LH: loop header
LB: loop body
LE: loop exit
PB: predicated region body
PF: predicated region fallthrough
CT: control target
= control target key end

     0   :  { %10 = vsyncpa [#allocation3], 0  ;;  %v384_v2 = vmov 0   ;;  %v385_v4 = vmov 1   ;;  %s545_s0 = inlined_call_operand.vmem [shape: s32[8,2], index: 0, kind: input, shape index: {}]   ;;  %s546_s1 = inlined_call_operand.vmem [shape: f32[32,2], index: 1, kind: input, shape index: {}]   ;;  %s547_s2 = inlined_call_operand.vmem [shape: f32[2,2], index: 2, kind: input, shape index: {}]   ;;  %s548_s3 = inlined_call_operand.hbm [shape: f32[1,2], index: 3, kind: output, shape index: {0}]   ;;  %s549_s4 = inlined_call_operand.hbm [shape: f32[1,128], index: 4, kind: output, shape index: {1}]  }
   0x1   :  { %v20_v0 = vld [vmem:[%s546_s1 + $0x10] sm:$0xff]  ;;  %v18_v1 = vld [vmem:[%s546_s1] sm:$0xff]  ;;  %327 = vset.pattern.permute.xlu1 %v384_v2  ;;  %326 = vset.pattern.permute.xlu0 %v384_v2  ;;  %v19_v3 = vld [vmem:[%s546_s1 + $0x8] sm:$0xff] }
   0x2   :  { %175 = vperm.xlu1 %327, %v20_v0   ;;  %165 = vperm.xlu0 %326, %v18_v1  }
   0x3   :  { %329 = vset.pattern.permute.xlu2 %v385_v4 }
   0x4   :  { %206 = vperm.xlu2 %329, %v19_v3  }
   0x5   :  { %11 = vsyncpa [#allocation5], 0  ;;  %v21_v5 = vld [vmem:[%s546_s1 + $0x18] sm:$0xff]  ;;  %v22_v6 = vlaneseq  ;;  %v27_v8 = vld [vmem:[%s545_s0] ss:$0 sm:$0xff]  ;;  %v386_v14 = vmov 0.0  }
   0x6   :  { %v44_v9 = vld [vmem:[%s545_s0 + $0x1] ss:$0 sm:$0xff]  ;;  %v61_v13 = vld [vmem:[%s545_s0 + $0x2] ss:$0 sm:$0xff]  ;;  %v78_v19 = vld [vmem:[%s545_s0 + $0x3] ss:$0 sm:$0xff] }
   0x7   :  { %v426_v7 = vshrl.u32 %v22_v6, 7  ;;  %v95_v29 = vld [vmem:[%s545_s0 + $0x4] ss:$0 sm:$0xff]  ;;  %v112_v38 = vld [vmem:[%s545_s0 + $0x5] ss:$0 sm:$0xff]  ;;  %s387_s15 = smov [#allocation2]  }
   0x8   :  { %v129_v47 = vld [vmem:[%s545_s0 + $0x6] ss:$0 sm:$0xff]  ;;  %v146_v56 = vld [vmem:[%s545_s0 + $0x7] ss:$0 sm:$0xff]  ;;  %s260_s16 = sshll.u32 %s387_s15, 4  ;;  %s262_s19 = sshll.u32 %s548_s3, 4  ;;  %s261_s16 = int_to_ptr.vmem [resolvable:$true] %s260_s16  ;;  %s263_s19 = int_to_ptr.hbm [resolvable:$true] %s262_s19 }
   0x9   :  { %v435_v10 = vadd.s32 16, %v426_v7  ;;  %v438_v11 = vadd.s32 8, %v426_v7  ;;  %v441_v12 = vadd.s32 24, %v426_v7  ;;  %vm28_vm0 = vcmp.eq.s32.totalorder %v27_v8, %v426_v7  ;;  %s273_s23 = sshll.u32 %s549_s4, 4  ;;  %s274_s23 = int_to_ptr.hbm [resolvable:$true] %s273_s23 }
   0xa   :  { %328 = vset.pattern.permute.xlu1 %v385_v4  ;;  %170 = vperm.xlu0 %326, %v19_v3   ;;  %vm45_vm1 = vcmp.eq.s32.totalorder %v44_v9, %v426_v7  ;;  %v287_v15 = vsel %vm28_vm0, 1.0, %v386_v14  ;;  %vm62_vm8 = vcmp.eq.s32.totalorder %v61_v13, %v426_v7  ;;  %vm79_vm12 = vcmp.eq.s32.totalorder %v78_v19, %v426_v7 }
   0xb   :  { %202 = vperm.xlu1 %328, %v18_v1   ;;  %vm30_vm2 = vcmp.eq.s32.totalorder %v27_v8, %v435_v10  ;;  %vm47_vm3 = vcmp.eq.s32.totalorder %v44_v9, %v435_v10  ;;  %vm29_vm4 = vcmp.eq.s32.totalorder %v27_v8, %v438_v11  ;;  %vm46_vm5 = vcmp.eq.s32.totalorder %v44_v9, %v438_v11 }
   0xc   :  { %330 = vset.pattern.permute.xlu2 %v384_v2  ;;  %vm31_vm6 = vcmp.eq.s32.totalorder %v27_v8, %v441_v12  ;;  %vm48_vm7 = vcmp.eq.s32.totalorder %v44_v9, %v441_v12  ;;  %v291_v16 = vsel %vm45_vm1, 1.0, %v386_v14  ;;  %v289_v17 = vsel %vm30_vm2, 1.0, %v386_v14 }
   0xd   :  { %180 = vperm.xlu2 %330, %v21_v5   ;;  %v293_v18 = vsel %vm47_vm3, 1.0, %v386_v14  ;;  %v288_v20 = vsel %vm29_vm4, 1.0, %v386_v14  ;;  %v292_v21 = vsel %vm46_vm5, 1.0, %v386_v14  ;;  %v290_v22 = vsel %vm31_vm6, 1.0, %v386_v14 }
   0xe   :  { %v294_v23 = vsel %vm48_vm7, 1.0, %v386_v14  ;;  %v57_v24 = vadd.f32 %v291_v16, %v287_v15  ;;  %vm64_vm9 = vcmp.eq.s32.totalorder %v61_v13, %v435_v10  ;;  %vm63_vm10 = vcmp.eq.s32.totalorder %v61_v13, %v438_v11 }
   0xf   :  { %vm65_vm11 = vcmp.eq.s32.totalorder %v61_v13, %v441_v12  ;;  %v295_v25 = vsel %vm62_vm8, 1.0, %v386_v14  ;;  %v59_v26 = vadd.f32 %v293_v18, %v289_v17  ;;  %v58_v27 = vadd.f32 %v292_v21, %v288_v20 }
  0x10   :  { %v60_v28 = vadd.f32 %v294_v23, %v290_v22  ;;  %v297_v30 = vsel %vm64_vm9, 1.0, %v386_v14  ;;  %v296_v31 = vsel %vm63_vm10, 1.0, %v386_v14  ;;  %v298_v32 = vsel %vm65_vm11, 1.0, %v386_v14 }
  0x11   :  { %v74_v33 = vadd.f32 %v295_v25, %v57_v24  ;;  %vm81_vm13 = vcmp.eq.s32.totalorder %v78_v19, %v435_v10  ;;  %vm80_vm14 = vcmp.eq.s32.totalorder %v78_v19, %v438_v11  ;;  %vm82_vm15 = vcmp.eq.s32.totalorder %v78_v19, %v441_v12 }
  0x12   :  { %331 = vset.pattern.permute.xlu0 %v385_v4  ;;  %v299_v34 = vsel %vm79_vm12, 1.0, %v386_v14  ;;  %vm96_vm0 = vcmp.eq.s32.totalorder %v95_v29, %v426_v7  ;;  %v76_v35 = vadd.f32 %v297_v30, %v59_v26  ;;  %v75_v36 = vadd.f32 %v296_v31, %v58_v27 }
  0x13   :  { %214 = vperm.xlu1 %328, %v21_v5   ;;  %210 = vperm.xlu0 %331, %v20_v0   ;;  %v77_v37 = vadd.f32 %v298_v32, %v60_v28  ;;  %v301_v39 = vsel %vm81_vm13, 1.0, %v386_v14  ;;  %v300_v40 = vsel %vm80_vm14, 1.0, %v386_v14  ;;  %v302_v41 = vsel %vm82_vm15, 1.0, %v386_v14 }
  0x14   :  { %v91_v42 = vadd.f32 %v299_v34, %v74_v33  ;;  %vm98_vm1 = vcmp.eq.s32.totalorder %v95_v29, %v435_v10  ;;  %vm97_vm2 = vcmp.eq.s32.totalorder %v95_v29, %v438_v11  ;;  %vm99_vm3 = vcmp.eq.s32.totalorder %v95_v29, %v441_v12 }
  0x15   :  { %v303_v43 = vsel %vm96_vm0, 1.0, %v386_v14  ;;  %vm113_vm4 = vcmp.eq.s32.totalorder %v112_v38, %v426_v7  ;;  %v93_v44 = vadd.f32 %v301_v39, %v76_v35  ;;  %v92_v45 = vadd.f32 %v300_v40, %v75_v36 }
  0x16   :  { %v94_v46 = vadd.f32 %v302_v41, %v77_v37  ;;  %v305_v48 = vsel %vm98_vm1, 1.0, %v386_v14  ;;  %v304_v49 = vsel %vm97_vm2, 1.0, %v386_v14  ;;  %v306_v50 = vsel %vm99_vm3, 1.0, %v386_v14 }
  0x17   :  { %v108_v51 = vadd.f32 %v303_v43, %v91_v42  ;;  %vm115_vm5 = vcmp.eq.s32.totalorder %v112_v38, %v435_v10  ;;  %vm114_vm6 = vcmp.eq.s32.totalorder %v112_v38, %v438_v11  ;;  %vm116_vm7 = vcmp.eq.s32.totalorder %v112_v38, %v441_v12 }
  0x18   :  { %v307_v52 = vsel %vm113_vm4, 1.0, %v386_v14  ;;  %vm130_vm8 = vcmp.eq.s32.totalorder %v129_v47, %v426_v7  ;;  %v110_v53 = vadd.f32 %v305_v48, %v93_v44  ;;  %v109_v54 = vadd.f32 %v304_v49, %v92_v45 }
  0x19   :  { %v111_v55 = vadd.f32 %v306_v50, %v94_v46  ;;  %v309_v57 = vsel %vm115_vm5, 1.0, %v386_v14  ;;  %v308_v58 = vsel %vm114_vm6, 1.0, %v386_v14  ;;  %v310_v59 = vsel %vm116_vm7, 1.0, %v386_v14 }
  0x1a   :  { %v125_v60 = vadd.f32 %v307_v52, %v108_v51  ;;  %vm132_vm9 = vcmp.eq.s32.totalorder %v129_v47, %v435_v10  ;;  %vm131_vm10 = vcmp.eq.s32.totalorder %v129_v47, %v438_v11  ;;  %vm133_vm11 = vcmp.eq.s32.totalorder %v129_v47, %v441_v12 }
  0x1b   :  { %v311_v61 = vsel %vm130_vm8, 1.0, %v386_v14  ;;  %vm147_vm12 = vcmp.eq.s32.totalorder %v146_v56, %v426_v7  ;;  %v127_v63 = vadd.f32 %v309_v57, %v110_v53  ;;  %v126_v0 = vadd.f32 %v308_v58, %v109_v54 }
  0x1c   :  { %v128_v1 = vadd.f32 %v310_v59, %v111_v55  ;;  %v313_v2 = vsel %vm132_vm9, 1.0, %v386_v14  ;;  %v312_v3 = vsel %vm131_vm10, 1.0, %v386_v14  ;;  %v314_v4 = vsel %vm133_vm11, 1.0, %v386_v14 }
  0x1d   :  { %v142_v5 = vadd.f32 %v311_v61, %v125_v60  ;;  %vm149_vm13 = vcmp.eq.s32.totalorder %v146_v56, %v435_v10  ;;  %vm148_vm14 = vcmp.eq.s32.totalorder %v146_v56, %v438_v11  ;;  %vm150_vm15 = vcmp.eq.s32.totalorder %v146_v56, %v441_v12  ;;  %v234_v56 = vld [vmem:[%s547_s2] sm:$0x1]  ;;  %v235_v60 = vld [vmem:[%s547_s2 + $0x1] sm:$0x1]  ;;  %s388_s2 = smov [#allocation4]  }
  0x1e   :  { %v315_v6 = vsel %vm147_vm12, 1.0, %v386_v14  ;;  %v144_v9 = vadd.f32 %v313_v2, %v127_v63  ;;  %v143_v13 = vadd.f32 %v312_v3, %v126_v0  ;;  %v145_v15 = vadd.f32 %v314_v4, %v128_v1  ;;  %s271_s20 = sshll.u32 %s388_s2, 4  ;;  %s272_s20 = int_to_ptr.vmem [resolvable:$true] %s271_s20 }
  0x1f   :  { %v317_v16 = vsel %vm149_vm13, 1.0, %v386_v14  ;;  %v316_v17 = vsel %vm148_vm14, 1.0, %v386_v14  ;;  %v318_v18 = vsel %vm150_vm15, 1.0, %v386_v14  ;;  %v159_v19 = vadd.f32 %v315_v6, %v142_v5 }
  0x20   :  { %v161_v20 = vadd.f32 %v317_v16, %v144_v9  ;;  %v160_v10 = vadd.f32 %v316_v17, %v143_v13  ;;  %v162_v21 = vadd.f32 %v318_v18, %v145_v15  ;;  %vm187_vm0 = vcmask 15360  }
  0x21   :  { %vm238_vm1 = vcmask 8192  }
  0x5e   :  { %v207_v62 = vpop.permute.xlu2 %206 }
  0x5f   :  { %v218_v29 = vmul.f32 %v207_v62, %v160_v10 }
  0x61   :  { %v222_v34 = vsel %vm187_vm0, %v218_v29, 0.0 }
  0x67   :  { %v181_v11 = vpop.permute.xlu2 %180 }
  0x68   :  { %v186_v26 = vmul.f32 %v181_v11, %v162_v21 }
  0x6a   :  { %v193_v32 = vsel %vm187_vm0, %v186_v26, 0.0 }
  0x74   :  { %v166_v8 = vpop.permute.xlu0 %165  ;;  %v176_v7 = vpop.permute.xlu1 %175 }
  0x75   :  { %v183_v22 = vmul.f32 %v166_v8, %v159_v19  ;;  %v185_v23 = vmul.f32 %v176_v7, %v161_v20 }
  0x77   :  { %v188_v27 = vsel %vm187_vm0, %v183_v22, 0.0  ;;  %v191_v14 = vsel %vm187_vm0, %v185_v23, 0.0 }
  0x7c   :  { %v171_v12 = vpop.permute.xlu0 %170 }
  0x7d   :  { %v184_v24 = vmul.f32 %v171_v12, %v160_v10  ;;  %v203_v25 = vpop.permute.xlu1 %202 }
  0x7e   :  { %v217_v31 = vmul.f32 %v203_v25, %v159_v19 }
  0x7f   :  { %v189_v28 = vsel %vm187_vm0, %v184_v24, 0.0 }
  0x80   :  { %v190_v30 = vadd.f32 %v189_v28, %v188_v27  ;;  %v221_v35 = vsel %vm187_vm0, %v217_v31, 0.0 }
  0x81   :  { %v223_v42 = vadd.f32 %v222_v34, %v221_v35 }
  0x82   :  { %v192_v33 = vadd.f32 %v191_v14, %v190_v30 }
  0x84   :  { %v194_v36 = vadd.f32 %v193_v32, %v192_v33 }
  0x85   :  { %v215_v37 = vpop.permute.xlu1 %214  ;;  %v211_v38 = vpop.permute.xlu0 %210 }
  0x86   :  { %v195_v39 = vrot.slane %v194_v36, 4  ;;  %v220_v40 = vmul.f32 %v215_v37, %v162_v21  ;;  %v219_v41 = vmul.f32 %v211_v38, %v161_v20 }
  0x88   :  { %v196_v43 = vadd.f32 %v195_v39, %v194_v36  ;;  %v224_v44 = vsel %vm187_vm0, %v219_v41, 0.0  ;;  %v226_v47 = vsel %vm187_vm0, %v220_v40, 0.0 }
  0x89   :  { %v225_v45 = vadd.f32 %v224_v44, %v223_v42 }
  0x8a   :  { %v197_v46 = vrot.slane %v196_v43, 2 }
  0x8b   :  { %v227_v48 = vadd.f32 %v226_v47, %v225_v45 }
  0x8c   :  { %v198_v49 = vadd.f32 %v197_v46, %v196_v43 }
  0x8d   :  { %v228_v50 = vrot.slane %v227_v48, 4 }
  0x8e   :  { %v199_v51 = vrot.slane %v198_v49, 1 }
  0x8f   :  { %v229_v52 = vadd.f32 %v228_v50, %v227_v48 }
  0x90   :  { %v200_v54 = vadd.f32 %v199_v51, %v198_v49 }
  0x91   :  { %v230_v53 = vrot.slane %v229_v52, 2 }
  0x92   :  { %v236_v59 = vmul.f32 %v234_v56, %v200_v54 }
  0x93   :  { %v231_v55 = vadd.f32 %v230_v53, %v229_v52 }
  0x95   :  { %v232_v57 = vrot.slane %v231_v55, 1 }
  0x97   :  { %v233_v58 = vadd.f32 %v232_v57, %v231_v55 }
  0x99   :  { %v237_v61 = vadd.f32 %v236_v59, %v233_v58 }
  0x9b   :  { %v240_v62 = vsub.f32 %v235_v60, %v237_v61  ;;  %239 = vst.msk [vmem:[#allocation2] sm:$0x1] %vm238_vm1, %v237_v61 }
  0x9c   :  { %265 = dma.vmem_to_hbm [thread:$0]  %s261_s16, 16, %s263_s19, [#allocation3]  }
  0x9d   :  { %v241_v63 = vmul.f32 %v240_v62, %v240_v62 }
  0x9f   :  { %v242_v0 = vsel %vm238_vm1, %v241_v63, 0.0 }
  0xa0   :  { %243 = vadd.xlane.f32.xlu2 %v242_v0 }
 0x113   :  { %v244_v1 = vpop.xlane.xlu2 %243 }
 0x114   :  { %v245_v2 = vrot.slane %v244_v1, 4 }
 0x116   :  { %v246_v3 = vadd.f32 %v245_v2, %v244_v1 }
 0x118   :  { %v247_v4 = vrot.slane %v246_v3, 2 }
 0x11a   :  { %v248_v5 = vadd.f32 %v247_v4, %v246_v3 }
 0x11c   :  { %v249_v6 = vrot.slane %v248_v5, 1 }
 0x11e   :  { %v250_v8 = vadd.f32 %v249_v6, %v248_v5 }
 0x120   :  { %319 = vpush %v250_v8 }
 0x151   :  { %s320_s24 = spop %319 }
 0x152   :  { %v252_v7 = vstv %s320_s24 }
 0x153   :  { %254 = vst [vmem:[#allocation4] sm:$0x1] %v252_v7 }
 0x154   :  { %276 = dma.vmem_to_hbm [thread:$0]  %s272_s20, 16, %s274_s23, [#allocation5]  }
 0x155   :  { %380 = dma.done.wait [#allocation3], 16  }
 0x156   :  { %381 = vsyncadd [#allocation3], 4294967280 }
 0x157   :  { %382 = dma.done.wait [#allocation5], 16  }
 0x158   :  { %383 = vsyncadd [#allocation5], 4294967280 }
 0x159   :  { %285 = vsyncpa [#allocation3], 1 }
 0x15a   :  { %286 = vsyncpa [#allocation5], 1 }

// kernel: tpu_custom_call.1
= control target key start
LH: loop header
LB: loop body
LE: loop exit
PB: predicated region body
PF: predicated region fallthrough
CT: control target
= control target key end

     0   :  { %10 = vsyncpa [#allocation3], 0  ;;  %v400_v2 = vmov 0   ;;  %v401_v4 = vmov 1   ;;  %s561_s0 = inlined_call_operand.vmem [shape: s32[8,2], index: 0, kind: input, shape index: {}]   ;;  %s562_s1 = inlined_call_operand.vmem [shape: f32[32,2], index: 1, kind: input, shape index: {}]   ;;  %s563_s2 = inlined_call_operand.vmem [shape: f32[2,2], index: 2, kind: input, shape index: {}]   ;;  %s564_s3 = inlined_call_operand.hbm [shape: f32[1,2], index: 3, kind: output, shape index: {0}]   ;;  %s565_s4 = inlined_call_operand.hbm [shape: f32[1,128], index: 4, kind: output, shape index: {1}]  }
   0x1   :  { %v20_v0 = vld [vmem:[%s562_s1 + $0x10] sm:$0xff]  ;;  %v18_v1 = vld [vmem:[%s562_s1] sm:$0xff]  ;;  %335 = vset.pattern.permute.xlu1 %v400_v2  ;;  %334 = vset.pattern.permute.xlu0 %v400_v2  ;;  %v19_v3 = vld [vmem:[%s562_s1 + $0x8] sm:$0xff] }
   0x2   :  { %183 = vperm.xlu1 %335, %v20_v0   ;;  %173 = vperm.xlu0 %334, %v18_v1  }
   0x3   :  { %337 = vset.pattern.permute.xlu2 %v401_v4 }
   0x4   :  { %214 = vperm.xlu2 %337, %v19_v3  }
   0x5   :  { %11 = vsyncpa [#allocation5], 0  ;;  %v21_v5 = vld [vmem:[%s562_s1 + $0x18] sm:$0xff]  ;;  %v22_v6 = vlaneseq  ;;  %v340_v8 = vld [vmem:[%s561_s0] ss:$0 sm:$0xff]  ;;  %v402_v14 = vmov 0.0  }
   0x6   :  { %v341_v9 = vld [vmem:[%s561_s0 + $0x1] ss:$0 sm:$0xff]  ;;  %v342_v13 = vld [vmem:[%s561_s0 + $0x2] ss:$0 sm:$0xff]  ;;  %v343_v17 = vld [vmem:[%s561_s0 + $0x3] ss:$0 sm:$0xff] }
   0x7   :  { %v442_v7 = vshrl.u32 %v22_v6, 7  ;;  %v344_v26 = vld [vmem:[%s561_s0 + $0x4] ss:$0 sm:$0xff]  ;;  %v345_v35 = vld [vmem:[%s561_s0 + $0x5] ss:$0 sm:$0xff]  ;;  %s403_s15 = smov [#allocation2]  }
   0x8   :  { %v346_v44 = vld [vmem:[%s561_s0 + $0x6] ss:$0 sm:$0xff]  ;;  %v347_v53 = vld [vmem:[%s561_s0 + $0x7] ss:$0 sm:$0xff]  ;;  %s268_s16 = sshll.u32 %s403_s15, 4  ;;  %s270_s19 = sshll.u32 %s564_s3, 4  ;;  %s269_s16 = int_to_ptr.vmem [resolvable:$true] %s268_s16  ;;  %s271_s19 = int_to_ptr.hbm [resolvable:$true] %s270_s19 }
   0x9   :  { %v451_v10 = vadd.s32 16, %v442_v7  ;;  %v454_v11 = vadd.s32 8, %v442_v7  ;;  %v457_v12 = vadd.s32 24, %v442_v7  ;;  %vm29_vm0 = vcmp.eq.s32.totalorder %v340_v8, %v442_v7  ;;  %s281_s23 = sshll.u32 %s565_s4, 4  ;;  %s282_s23 = int_to_ptr.hbm [resolvable:$true] %s281_s23 }
   0xa   :  { %336 = vset.pattern.permute.xlu1 %v401_v4  ;;  %178 = vperm.xlu0 %334, %v19_v3   ;;  %vm47_vm1 = vcmp.eq.s32.totalorder %v341_v9, %v442_v7  ;;  %v295_v15 = vsel %vm29_vm0, 1.0, %v402_v14  ;;  %vm65_vm8 = vcmp.eq.s32.totalorder %v342_v13, %v442_v7  ;;  %vm83_vm12 = vcmp.eq.s32.totalorder %v343_v17, %v442_v7 }
   0xb   :  { %210 = vperm.xlu1 %336, %v18_v1   ;;  %vm31_vm2 = vcmp.eq.s32.totalorder %v340_v8, %v451_v10  ;;  %vm49_vm3 = vcmp.eq.s32.totalorder %v341_v9, %v451_v10  ;;  %vm30_vm4 = vcmp.eq.s32.totalorder %v340_v8, %v454_v11  ;;  %vm48_vm5 = vcmp.eq.s32.totalorder %v341_v9, %v454_v11 }
   0xc   :  { %338 = vset.pattern.permute.xlu2 %v400_v2  ;;  %vm32_vm6 = vcmp.eq.s32.totalorder %v340_v8, %v457_v12  ;;  %vm50_vm7 = vcmp.eq.s32.totalorder %v341_v9, %v457_v12  ;;  %v299_v16 = vsel %vm47_vm1, 1.0, %v402_v14  ;;  %v297_v18 = vsel %vm31_vm2, 1.0, %v402_v14 }
   0xd   :  { %188 = vperm.xlu2 %338, %v21_v5   ;;  %v301_v19 = vsel %vm49_vm3, 1.0, %v402_v14  ;;  %v296_v20 = vsel %vm30_vm4, 1.0, %v402_v14  ;;  %v300_v21 = vsel %vm48_vm5, 1.0, %v402_v14  ;;  %v298_v22 = vsel %vm32_vm6, 1.0, %v402_v14 }
   0xe   :  { %v302_v23 = vsel %vm50_vm7, 1.0, %v402_v14  ;;  %v59_v24 = vadd.f32 %v299_v16, %v295_v15  ;;  %vm67_vm9 = vcmp.eq.s32.totalorder %v342_v13, %v451_v10  ;;  %vm66_vm10 = vcmp.eq.s32.totalorder %v342_v13, %v454_v11 }
   0xf   :  { %vm68_vm11 = vcmp.eq.s32.totalorder %v342_v13, %v457_v12  ;;  %v303_v25 = vsel %vm65_vm8, 1.0, %v402_v14  ;;  %v61_v27 = vadd.f32 %v301_v19, %v297_v18  ;;  %v60_v28 = vadd.f32 %v300_v21, %v296_v20 }
  0x10   :  { %v62_v29 = vadd.f32 %v302_v23, %v298_v22  ;;  %v305_v30 = vsel %vm67_vm9, 1.0, %v402_v14  ;;  %v304_v31 = vsel %vm66_vm10, 1.0, %v402_v14  ;;  %v306_v32 = vsel %vm68_vm11, 1.0, %v402_v14 }
  0x11   :  { %v77_v33 = vadd.f32 %v303_v25, %v59_v24  ;;  %vm85_vm13 = vcmp.eq.s32.totalorder %v343_v17, %v451_v10  ;;  %vm84_vm14 = vcmp.eq.s32.totalorder %v343_v17, %v454_v11  ;;  %vm86_vm15 = vcmp.eq.s32.totalorder %v343_v17, %v457_v12 }
  0x12   :  { %339 = vset.pattern.permute.xlu0 %v401_v4  ;;  %v307_v34 = vsel %vm83_vm12, 1.0, %v402_v14  ;;  %vm101_vm0 = vcmp.eq.s32.totalorder %v344_v26, %v442_v7  ;;  %v79_v36 = vadd.f32 %v305_v30, %v61_v27  ;;  %v78_v37 = vadd.f32 %v304_v31, %v60_v28 }
  0x13   :  { %222 = vperm.xlu1 %336, %v21_v5   ;;  %218 = vperm.xlu0 %339, %v20_v0   ;;  %v80_v38 = vadd.f32 %v306_v32, %v62_v29  ;;  %v309_v39 = vsel %vm85_vm13, 1.0, %v402_v14  ;;  %v308_v40 = vsel %vm84_vm14, 1.0, %v402_v14  ;;  %v310_v41 = vsel %vm86_vm15, 1.0, %v402_v14 }
  0x14   :  { %v95_v42 = vadd.f32 %v307_v34, %v77_v33  ;;  %vm103_vm1 = vcmp.eq.s32.totalorder %v344_v26, %v451_v10  ;;  %vm102_vm2 = vcmp.eq.s32.totalorder %v344_v26, %v454_v11  ;;  %vm104_vm3 = vcmp.eq.s32.totalorder %v344_v26, %v457_v12 }
  0x15   :  { %v311_v43 = vsel %vm101_vm0, 1.0, %v402_v14  ;;  %vm119_vm4 = vcmp.eq.s32.totalorder %v345_v35, %v442_v7  ;;  %v97_v45 = vadd.f32 %v309_v39, %v79_v36  ;;  %v96_v46 = vadd.f32 %v308_v40, %v78_v37 }
  0x16   :  { %v98_v47 = vadd.f32 %v310_v41, %v80_v38  ;;  %v313_v48 = vsel %vm103_vm1, 1.0, %v402_v14  ;;  %v312_v49 = vsel %vm102_vm2, 1.0, %v402_v14  ;;  %v314_v50 = vsel %vm104_vm3, 1.0, %v402_v14 }
  0x17   :  { %v113_v51 = vadd.f32 %v311_v43, %v95_v42  ;;  %vm121_vm5 = vcmp.eq.s32.totalorder %v345_v35, %v451_v10  ;;  %vm120_vm6 = vcmp.eq.s32.totalorder %v345_v35, %v454_v11  ;;  %vm122_vm7 = vcmp.eq.s32.totalorder %v345_v35, %v457_v12 }
  0x18   :  { %v315_v52 = vsel %vm119_vm4, 1.0, %v402_v14  ;;  %vm137_vm8 = vcmp.eq.s32.totalorder %v346_v44, %v442_v7  ;;  %v115_v54 = vadd.f32 %v313_v48, %v97_v45  ;;  %v114_v55 = vadd.f32 %v312_v49, %v96_v46 }
  0x19   :  { %v116_v56 = vadd.f32 %v314_v50, %v98_v47  ;;  %v317_v57 = vsel %vm121_vm5, 1.0, %v402_v14  ;;  %v316_v58 = vsel %vm120_vm6, 1.0, %v402_v14  ;;  %v318_v59 = vsel %vm122_vm7, 1.0, %v402_v14 }
  0x1a   :  { %v131_v60 = vadd.f32 %v315_v52, %v113_v51  ;;  %vm139_vm9 = vcmp.eq.s32.totalorder %v346_v44, %v451_v10  ;;  %vm138_vm10 = vcmp.eq.s32.totalorder %v346_v44, %v454_v11  ;;  %vm140_vm11 = vcmp.eq.s32.totalorder %v346_v44, %v457_v12 }
  0x1b   :  { %v319_v61 = vsel %vm137_vm8, 1.0, %v402_v14  ;;  %vm155_vm12 = vcmp.eq.s32.totalorder %v347_v53, %v442_v7  ;;  %v133_v63 = vadd.f32 %v317_v57, %v115_v54  ;;  %v132_v0 = vadd.f32 %v316_v58, %v114_v55 }
  0x1c   :  { %v134_v1 = vadd.f32 %v318_v59, %v116_v56  ;;  %v321_v2 = vsel %vm139_vm9, 1.0, %v402_v14  ;;  %v320_v3 = vsel %vm138_vm10, 1.0, %v402_v14  ;;  %v322_v4 = vsel %vm140_vm11, 1.0, %v402_v14  ;;  %v242_v56 = vld [vmem:[%s563_s2] sm:$0x1] }
  0x1d   :  { %v149_v5 = vadd.f32 %v319_v61, %v131_v60  ;;  %vm157_vm13 = vcmp.eq.s32.totalorder %v347_v53, %v451_v10  ;;  %vm156_vm14 = vcmp.eq.s32.totalorder %v347_v53, %v454_v11  ;;  %vm158_vm15 = vcmp.eq.s32.totalorder %v347_v53, %v457_v12  ;;  %v243_v60 = vld [vmem:[%s563_s2 + $0x1] sm:$0x1]  ;;  %s404_s2 = smov [#allocation4]  }
  0x1e   :  { %v323_v6 = vsel %vm155_vm12, 1.0, %v402_v14  ;;  %v151_v9 = vadd.f32 %v321_v2, %v133_v63  ;;  %v150_v13 = vadd.f32 %v320_v3, %v132_v0  ;;  %v152_v15 = vadd.f32 %v322_v4, %v134_v1  ;;  %s279_s20 = sshll.u32 %s404_s2, 4  ;;  %s280_s20 = int_to_ptr.vmem [resolvable:$true] %s279_s20 }
  0x1f   :  { %v325_v16 = vsel %vm157_vm13, 1.0, %v402_v14  ;;  %v324_v17 = vsel %vm156_vm14, 1.0, %v402_v14  ;;  %v326_v18 = vsel %vm158_vm15, 1.0, %v402_v14  ;;  %v167_v19 = vadd.f32 %v323_v6, %v149_v5 }
  0x20   :  { %v169_v20 = vadd.f32 %v325_v16, %v151_v9  ;;  %v168_v10 = vadd.f32 %v324_v17, %v150_v13  ;;  %v170_v21 = vadd.f32 %v326_v18, %v152_v15  ;;  %vm195_vm0 = vcmask 15360  }
  0x21   :  { %vm246_vm1 = vcmask 8192  }
  0x5e   :  { %v215_v62 = vpop.permute.xlu2 %214 }
  0x5f   :  { %v226_v29 = vmul.f32 %v215_v62, %v168_v10 }
  0x61   :  { %v230_v34 = vsel %vm195_vm0, %v226_v29, 0.0 }
  0x67   :  { %v189_v11 = vpop.permute.xlu2 %188 }
  0x68   :  { %v194_v26 = vmul.f32 %v189_v11, %v170_v21 }
  0x6a   :  { %v201_v32 = vsel %vm195_vm0, %v194_v26, 0.0 }
  0x74   :  { %v174_v8 = vpop.permute.xlu0 %173  ;;  %v184_v7 = vpop.permute.xlu1 %183 }
  0x75   :  { %v191_v22 = vmul.f32 %v174_v8, %v167_v19  ;;  %v193_v23 = vmul.f32 %v184_v7, %v169_v20 }
  0x77   :  { %v196_v27 = vsel %vm195_vm0, %v191_v22, 0.0  ;;  %v199_v14 = vsel %vm195_vm0, %v193_v23, 0.0 }
  0x7c   :  { %v179_v12 = vpop.permute.xlu0 %178 }
  0x7d   :  { %v192_v24 = vmul.f32 %v179_v12, %v168_v10  ;;  %v211_v25 = vpop.permute.xlu1 %210 }
  0x7e   :  { %v225_v31 = vmul.f32 %v211_v25, %v167_v19 }
  0x7f   :  { %v197_v28 = vsel %vm195_vm0, %v192_v24, 0.0 }
  0x80   :  { %v198_v30 = vadd.f32 %v197_v28, %v196_v27  ;;  %v229_v35 = vsel %vm195_vm0, %v225_v31, 0.0 }
  0x81   :  { %v231_v42 = vadd.f32 %v230_v34, %v229_v35 }
  0x82   :  { %v200_v33 = vadd.f32 %v199_v14, %v198_v30 }
  0x84   :  { %v202_v36 = vadd.f32 %v201_v32, %v200_v33 }
  0x85   :  { %v223_v37 = vpop.permute.xlu1 %222  ;;  %v219_v38 = vpop.permute.xlu0 %218 }
  0x86   :  { %v203_v39 = vrot.slane %v202_v36, 4  ;;  %v228_v40 = vmul.f32 %v223_v37, %v170_v21  ;;  %v227_v41 = vmul.f32 %v219_v38, %v169_v20 }
  0x88   :  { %v204_v43 = vadd.f32 %v203_v39, %v202_v36  ;;  %v232_v44 = vsel %vm195_vm0, %v227_v41, 0.0  ;;  %v234_v47 = vsel %vm195_vm0, %v228_v40, 0.0 }
  0x89   :  { %v233_v45 = vadd.f32 %v232_v44, %v231_v42 }
  0x8a   :  { %v205_v46 = vrot.slane %v204_v43, 2 }
  0x8b   :  { %v235_v48 = vadd.f32 %v234_v47, %v233_v45 }
  0x8c   :  { %v206_v49 = vadd.f32 %v205_v46, %v204_v43 }
  0x8d   :  { %v236_v50 = vrot.slane %v235_v48, 4 }
  0x8e   :  { %v207_v51 = vrot.slane %v206_v49, 1 }
  0x8f   :  { %v237_v52 = vadd.f32 %v236_v50, %v235_v48 }
  0x90   :  { %v208_v54 = vadd.f32 %v207_v51, %v206_v49 }
  0x91   :  { %v238_v53 = vrot.slane %v237_v52, 2 }
  0x92   :  { %v244_v59 = vmul.f32 %v242_v56, %v208_v54 }
  0x93   :  { %v239_v55 = vadd.f32 %v238_v53, %v237_v52 }
  0x95   :  { %v240_v57 = vrot.slane %v239_v55, 1 }
  0x97   :  { %v241_v58 = vadd.f32 %v240_v57, %v239_v55 }
  0x99   :  { %v245_v61 = vadd.f32 %v244_v59, %v241_v58 }
  0x9b   :  { %v248_v62 = vsub.f32 %v243_v60, %v245_v61  ;;  %247 = vst.msk [vmem:[#allocation2] sm:$0x1] %vm246_vm1, %v245_v61 }
  0x9c   :  { %273 = dma.vmem_to_hbm [thread:$0]  %s269_s16, 16, %s271_s19, [#allocation3]  }
  0x9d   :  { %v249_v63 = vmul.f32 %v248_v62, %v248_v62 }
  0x9f   :  { %v250_v0 = vsel %vm246_vm1, %v249_v63, 0.0 }
  0xa0   :  { %251 = vadd.xlane.f32.xlu2 %v250_v0 }
 0x113   :  { %v252_v1 = vpop.xlane.xlu2 %251 }
 0x114   :  { %v253_v2 = vrot.slane %v252_v1, 4 }
 0x116   :  { %v254_v3 = vadd.f32 %v253_v2, %v252_v1 }
 0x118   :  { %v255_v4 = vrot.slane %v254_v3, 2 }
 0x11a   :  { %v256_v5 = vadd.f32 %v255_v4, %v254_v3 }
 0x11c   :  { %v257_v6 = vrot.slane %v256_v5, 1 }
 0x11e   :  { %v258_v8 = vadd.f32 %v257_v6, %v256_v5 }
 0x120   :  { %327 = vpush %v258_v8 }
 0x151   :  { %s328_s24 = spop %327 }
 0x152   :  { %v260_v7 = vstv %s328_s24 }
 0x153   :  { %262 = vst [vmem:[#allocation4] sm:$0x1] %v260_v7 }
 0x154   :  { %284 = dma.vmem_to_hbm [thread:$0]  %s280_s20, 16, %s282_s23, [#allocation5]  }
 0x155   :  { %396 = dma.done.wait [#allocation3], 16  }
 0x156   :  { %397 = vsyncadd [#allocation3], 4294967280 }
 0x157   :  { %398 = dma.done.wait [#allocation5], 16  }
 0x158   :  { %399 = vsyncadd [#allocation5], 4294967280 }
 0x159   :  { %293 = vsyncpa [#allocation3], 1 }
 0x15a   :  { %294 = vsyncpa [#allocation5], 1 }

</bundles_post_ra>
